<compile_context>
chip_gen: v5e
topology: v5e:2x2
jax: 0.10.0
libtpu: 0.0.40
codegen_flags: <defaults>
</compile_context>

<pallas_src>
import jax
import jax.numpy as jnp
from jax.experimental import pallas as pl
from jax.experimental.pallas import tpu as pltpu


def _reference(x, r):
    """Pure-XLA pixel_unshuffle (also the fallback path for non-float dtypes)."""
    B, C, H, W = x.shape
    Ho, Wo = H // r, W // r
    t = x.reshape(B, C, Ho, r, Wo, r)
    t = jnp.transpose(t, (0, 1, 3, 5, 2, 4))
    return t.reshape(B, C * r * r, Ho, Wo)


def _largest_divisor_leq(n, limit):
    best = 1
    for d in range(1, n + 1):
        if n % d == 0 and d <= limit:
            best = d
    return best


def _choose_ho_block(Ho, max_rows):
    # Legal output-row blocks: divisors of Ho that are multiples of 8 (sublane
    # tile) or Ho itself (full extent satisfies the (8,128) BlockSpec rule).
    cands = [d for d in range(1, Ho + 1)
             if Ho % d == 0 and (d % 8 == 0 or d == Ho)]
    fitting = [d for d in cands if d <= max_rows]
    return max(fitting) if fitting else min(cands)


def _make_pixel_unshuffle_kernel(r, Wo, ho_blk, c_blk):
    W = r * Wo

    def kernel(p_ref, x_ref, o_ref):
        # p_ref : (W, r*Wo)            j-major permutation (VMEM resident)
        # x_ref : (c_blk, ho_blk*r, W)
        # o_ref : (c_blk, r*r, ho_blk, Wo)
        p = p_ref[...]
        for i in range(r):
            # Row select i: strided sublane read — no matmul, no broadcast.
            xi = x_ref[:, pl.ds(i, ho_blk, stride=r), :]            # (c, ho, W)
            # Column select (all j at once): one wide MXU matmul, M = c*ho.
            y = jnp.dot(xi.reshape(c_blk * ho_blk, W), p,
                        preferred_element_type=jnp.float32)          # (c*ho, r*Wo)
            y = y.reshape(c_blk, ho_blk, r * Wo).astype(o_ref.dtype)
            for j in range(r):
                o_ref[:, i * r + j, :, :] = y[:, :, j * Wo:(j + 1) * Wo]

    return kernel


def pixel_unshuffle(x, downscale_factor):
    """x: (B, C, H, W) -> (B, C*r*r, H//r, W//r), matching F.pixel_unshuffle."""
    r = int(downscale_factor)
    assert x.ndim == 4, "expected a 4-D (B, C, H, W) input"
    B, C, H, W = x.shape
    assert H % r == 0 and W % r == 0, "spatial dims must be divisible by r"
    Ho, Wo = H // r, W // r

    if r == 1:
        return x

    if not jnp.issubdtype(x.dtype, jnp.floating):
        # TODO(synk): integer/bool inputs use the pure-XLA copy path; the MXU
        # permutation-matmul trick is only an exact copy for floating dtypes.
        return _reference(x, r)

    itemsize = jnp.dtype(x.dtype).itemsize

    # Permutation matrix (W, r*Wo), j-major: P[w, j*Wo + wo] = [w == wo*r + j].
    # Kept in the input dtype (0/1 are exact in bf16/f16/f32).
    w_ = jnp.arange(W)[:, None]
    col = jnp.arange(r * Wo)[None, :]
    j_, wo_ = col // Wo, col % Wo
    P = (w_ == wo_ * r + j_).astype(x.dtype)
    p_bytes = W * r * Wo * itemsize

    # ---- generation-aware VMEM budget -----------------------------------
    try:
        vmem_cap = int(pltpu.get_tpu_info().vmem_capacity_bytes)
    except Exception:
        vmem_cap = 64 * 1024 * 1024            # conservative (v7x per-TC)
    vmem_limit = min(vmem_cap // 2, 48 * 1024 * 1024)
    # Per-step footprint ~ double-buffered (in + out) tiles + f32 matmul
    # intermediates + resident P  ->  budget one tile at ~1/6 of the limit.
    tile_budget = max((vmem_limit - p_bytes) // 6, 1)

    plane_bytes = H * W * itemsize
    if plane_bytes <= tile_budget:
        ho_blk = Ho
        c_blk = _largest_divisor_leq(C, max(1, tile_budget // plane_bytes))
    else:
        c_blk = 1
        ho_blk = _choose_ho_block(Ho, max(1, tile_budget // (r * W * itemsize)))

    # Keep the in-kernel (c, ho, W) -> (c*ho, W) merge a trivial relayout.
    if ho_blk % 8 != 0:
        c_blk = 1

    # v7x has 2 TensorCores: ensure >=2 independent grid points when possible.
    if B * (C // c_blk) * (Ho // ho_blk) < 2:
        if C > 1:
            c_blk = _largest_divisor_leq(C, max(1, c_blk // 2))
        elif Ho > 8:
            ho_blk = _choose_ho_block(Ho, max(8, ho_blk // 2))

    tile_bytes = c_blk * ho_blk * r * W * itemsize
    vmem_limit = int(min(max(vmem_limit, 6 * tile_bytes + p_bytes + (1 << 20)),
                         vmem_cap * 3 // 4))

    grid = (B, C // c_blk, Ho // ho_blk)
    Ht = ho_blk * r

    cost = pl.CostEstimate(
        flops=2 * B * C * H * W * (r * Wo),                 # permutation matmuls
        transcendentals=0,
        bytes_accessed=2 * B * C * H * W * itemsize + p_bytes,   # in + out + P
    )

    out5 = pl.pallas_call(
        _make_pixel_unshuffle_kernel(r, Wo, ho_blk, c_blk),
        out_shape=jax.ShapeDtypeStruct((B, C, r * r, Ho, Wo), x.dtype),
        grid_spec=pltpu.PrefetchScalarGridSpec(
            num_scalar_prefetch=0,
            grid=grid,
            in_specs=[
                # Permutation: constant index_map -> DMA'd once, VMEM resident.
                pl.BlockSpec((W, r * Wo), lambda b, cb, hb: (0, 0)),
                # x tile: squeezed batch, c_blk channels, Ht = ho_blk*r rows,
                # full W lane extent.
                pl.BlockSpec((pl.Squeezed(), c_blk, Ht, W),
                             lambda b, cb, hb: (b, cb, hb, 0)),
            ],
            # Output tile: full Wo lane extent (unmasked stores when Wo%128==0).
            out_specs=pl.BlockSpec((pl.Squeezed(), c_blk, r * r, ho_blk, Wo),
                                   lambda b, cb, hb: (b, cb, 0, hb, 0)),
        ),
        compiler_params=pltpu.CompilerParams(
            dimension_semantics=("parallel", "parallel", "parallel"),
            vmem_limit_bytes=vmem_limit,
        ),
        cost_estimate=cost,
    )(P, x)

    # (B, C, r*r, Ho, Wo) -> (B, C*r*r, Ho, Wo): contiguous merge, free in XLA.
    return out5.reshape(B, C * r * r, Ho, Wo)


if __name__ == "__main__":
    key = jax.random.PRNGKey(0)
    B, C, H, W = 2, 4, 16, 16
    r = 2

    x = jax.random.normal(key, (B, C, H, W), dtype=jnp.float32)

    out = pixel_unshuffle(x, r)
    jax.block_until_ready(out)

    ref = _reference(x, r)
    assert out.shape == (B, C * r * r, H // r, W // r)
    assert jnp.allclose(out, ref, atol=1e-6, rtol=1e-6)

    print("KERNEL_OK")
</pallas_src>

<mosaic_0001>
module attributes {stable_mosaic.version = 11 : i64} {
  func.func @kernel(%arg0: i32, %arg1: i32, %arg2: i32, %arg3: memref<16x16xf32, #tpu.memory_space<vmem>>, %arg4: memref<1x4x16x16xf32, #tpu.memory_space<vmem>>, %arg5: memref<1x4x4x8x8xf32, #tpu.memory_space<vmem>>) attributes {dimension_semantics = [#tpu.dimension_semantics<parallel>, #tpu.dimension_semantics<parallel>, #tpu.dimension_semantics<parallel>], iteration_bounds = array<i64: 2, 1, 1>, scalar_prefetch = 0 : i64, scratch_operands = 0 : i64, tpu.core_type = #tpu.core_type<tc>, window_params = [{pipeline_mode = #tpu.pipeline_mode<synchronous>, transform_indices = @transform_0, window_bounds = array<i64: 16, 16>}, {transform_indices = @transform_1, window_bounds = array<i64: 1, 4, 16, 16>}, {transform_indices = @transform_2, window_bounds = array<i64: 1, 4, 4, 8, 8>}]} {
    %c0 = arith.constant 0 : index
    %c0_0 = arith.constant 0 : index
    %0 = vector.load %arg3[%c0, %c0_0] : memref<16x16xf32, #tpu.memory_space<vmem>>, vector<16x16xf32>
    %c0_1 = arith.constant 0 : index
    %c0_2 = arith.constant 0 : index
    %c0_3 = arith.constant 0 : index
    %c0_4 = arith.constant 0 : index
    %1 = tpu.strided_load %arg4[%c0_1, %c0_2, %c0_3, %c0_4] {strides = array<i32: 1, 1, 2, 1>} : memref<1x4x16x16xf32, #tpu.memory_space<vmem>>, vector<1x4x8x16xf32>
    %2 = vector.shape_cast %1 : vector<1x4x8x16xf32> to vector<4x8x16xf32>
    %3 = vector.shape_cast %2 : vector<4x8x16xf32> to vector<32x16xf32>
    %cst = arith.constant dense<0.000000e+00> : vector<32x16xf32>
    %4 = tpu.matmul %3, %0, %cst {dimension_numbers = #tpu.dot_dimension_numbers<[1], [0], [0], [1], [0, 0, 1, 1], [], []>} : vector<32x16xf32>, vector<16x16xf32>, vector<32x16xf32> -> vector<32x16xf32>
    %5 = vector.shape_cast %4 : vector<32x16xf32> to vector<4x8x16xf32>
    %6 = vector.extract_strided_slice %5 {offsets = [0, 0, 0], sizes = [4, 8, 8], strides = [1, 1, 1]} : vector<4x8x16xf32> to vector<4x8x8xf32>
    %c0_5 = arith.constant 0 : index
    %c0_6 = arith.constant 0 : index
    %c0_7 = arith.constant 0 : index
    %c0_8 = arith.constant 0 : index
    %c0_9 = arith.constant 0 : index
    %7 = vector.load %arg5[%c0_5, %c0_6, %c0_7, %c0_8, %c0_9] : memref<1x4x4x8x8xf32, #tpu.memory_space<vmem>>, vector<1x4x1x8x8xf32>
    %8 = vector.shape_cast %7 : vector<1x4x1x8x8xf32> to vector<4x8x8xf32>
    %9 = vector.shape_cast %6 : vector<4x8x8xf32> to vector<1x4x1x8x8xf32>
    tpu.vector_store %arg5[%c0_5, %c0_6, %c0_7, %c0_8, %c0_9], %9 {strides = array<i32>} : memref<1x4x4x8x8xf32, #tpu.memory_space<vmem>>, vector<1x4x1x8x8xf32>,
    %10 = vector.extract_strided_slice %5 {offsets = [0, 0, 8], sizes = [4, 8, 8], strides = [1, 1, 1]} : vector<4x8x16xf32> to vector<4x8x8xf32>
    %c0_10 = arith.constant 0 : index
    %c0_11 = arith.constant 0 : index
    %c1 = arith.constant 1 : index
    %c0_12 = arith.constant 0 : index
    %c0_13 = arith.constant 0 : index
    %11 = vector.load %arg5[%c0_10, %c0_11, %c1, %c0_12, %c0_13] : memref<1x4x4x8x8xf32, #tpu.memory_space<vmem>>, vector<1x4x1x8x8xf32>
    %12 = vector.shape_cast %11 : vector<1x4x1x8x8xf32> to vector<4x8x8xf32>
    %13 = vector.shape_cast %10 : vector<4x8x8xf32> to vector<1x4x1x8x8xf32>
    tpu.vector_store %arg5[%c0_10, %c0_11, %c1, %c0_12, %c0_13], %13 {strides = array<i32>} : memref<1x4x4x8x8xf32, #tpu.memory_space<vmem>>, vector<1x4x1x8x8xf32>,
    %c0_14 = arith.constant 0 : index
    %c0_15 = arith.constant 0 : index
    %c1_16 = arith.constant 1 : index
    %c0_17 = arith.constant 0 : index
    %14 = tpu.strided_load %arg4[%c0_14, %c0_15, %c1_16, %c0_17] {strides = array<i32: 1, 1, 2, 1>} : memref<1x4x16x16xf32, #tpu.memory_space<vmem>>, vector<1x4x8x16xf32>
    %15 = vector.shape_cast %14 : vector<1x4x8x16xf32> to vector<4x8x16xf32>
    %16 = vector.shape_cast %15 : vector<4x8x16xf32> to vector<32x16xf32>
    %cst_18 = arith.constant dense<0.000000e+00> : vector<32x16xf32>
    %17 = tpu.matmul %16, %0, %cst_18 {dimension_numbers = #tpu.dot_dimension_numbers<[1], [0], [0], [1], [0, 0, 1, 1], [], []>} : vector<32x16xf32>, vector<16x16xf32>, vector<32x16xf32> -> vector<32x16xf32>
    %18 = vector.shape_cast %17 : vector<32x16xf32> to vector<4x8x16xf32>
    %19 = vector.extract_strided_slice %18 {offsets = [0, 0, 0], sizes = [4, 8, 8], strides = [1, 1, 1]} : vector<4x8x16xf32> to vector<4x8x8xf32>
    %c0_19 = arith.constant 0 : index
    %c0_20 = arith.constant 0 : index
    %c2 = arith.constant 2 : index
    %c0_21 = arith.constant 0 : index
    %c0_22 = arith.constant 0 : index
    %20 = vector.load %arg5[%c0_19, %c0_20, %c2, %c0_21, %c0_22] : memref<1x4x4x8x8xf32, #tpu.memory_space<vmem>>, vector<1x4x1x8x8xf32>
    %21 = vector.shape_cast %20 : vector<1x4x1x8x8xf32> to vector<4x8x8xf32>
    %22 = vector.shape_cast %19 : vector<4x8x8xf32> to vector<1x4x1x8x8xf32>
    tpu.vector_store %arg5[%c0_19, %c0_20, %c2, %c0_21, %c0_22], %22 {strides = array<i32>} : memref<1x4x4x8x8xf32, #tpu.memory_space<vmem>>, vector<1x4x1x8x8xf32>,
    %23 = vector.extract_strided_slice %18 {offsets = [0, 0, 8], sizes = [4, 8, 8], strides = [1, 1, 1]} : vector<4x8x16xf32> to vector<4x8x8xf32>
    %c0_23 = arith.constant 0 : index
    %c0_24 = arith.constant 0 : index
    %c3 = arith.constant 3 : index
    %c0_25 = arith.constant 0 : index
    %c0_26 = arith.constant 0 : index
    %24 = vector.load %arg5[%c0_23, %c0_24, %c3, %c0_25, %c0_26] : memref<1x4x4x8x8xf32, #tpu.memory_space<vmem>>, vector<1x4x1x8x8xf32>
    %25 = vector.shape_cast %24 : vector<1x4x1x8x8xf32> to vector<4x8x8xf32>
    %26 = vector.shape_cast %23 : vector<4x8x8xf32> to vector<1x4x1x8x8xf32>
    tpu.vector_store %arg5[%c0_23, %c0_24, %c3, %c0_25, %c0_26], %26 {strides = array<i32>} : memref<1x4x4x8x8xf32, #tpu.memory_space<vmem>>, vector<1x4x1x8x8xf32>,
    return
  }
  func.func @transform_0(%arg0: i32, %arg1: i32, %arg2: i32) -> (i32, i32) {
    %c0_i32 = arith.constant 0 : i32
    %c0_i32_0 = arith.constant 0 : i32
    %c0_i32_1 = arith.constant 0 : i32
    return %c0_i32, %c0_i32_0 : i32, i32
  }
  func.func @transform_1(%arg0: i32, %arg1: i32, %arg2: i32) -> (i32, i32, i32, i32) {
    %c0_i32 = arith.constant 0 : i32
    %c0_i32_0 = arith.constant 0 : i32
    return %arg0, %arg1, %arg2, %c0_i32 : i32, i32, i32, i32
  }
  func.func @transform_2(%arg0: i32, %arg1: i32, %arg2: i32) -> (i32, i32, i32, i32, i32) {
    %c0_i32 = arith.constant 0 : i32
    %c0_i32_0 = arith.constant 0 : i32
    %c0_i32_1 = arith.constant 0 : i32
    return %arg0, %arg1, %c0_i32, %arg2, %c0_i32_0 : i32, i32, i32, i32, i32
  }
}

</mosaic_0001>

<bundles_post_ra>
// kernel: tpu_custom_call.1
= control target key start
LH: loop header
LB: loop body
LE: loop exit
PB: predicated region body
PF: predicated region fallthrough
CT: control target
= control target key end

     0   :  { %7 = vsyncpa [#allocation3], 0  ;;  %s989_s0 = inlined_call_operand.hbm [shape: f32[16,16], index: 0, kind: input, shape index: {}]   ;;  %s990_s1 = inlined_call_operand.hbm [shape: f32[2,4,16,16], index: 1, kind: input, shape index: {}]   ;;  %s991_s2 = inlined_call_operand.hbm [shape: f32[2,4,4,8,8], index: 2, kind: output, shape index: {}]  }
   0x1   :  { %8 = vsyncpa [#allocation6], 0 }
   0x2   :  { %10 = vsyncpa [#allocation6 + $0x1], 0 }
   0x3   :  { %11 = vsyncpa [#allocation4], 0 }
   0x4   :  { %13 = vsyncpa [#allocation4 + $0x1], 0  ;;  %s790_s9 = smov 0   ;;  %s792_s10 = smov 0  }
   0x5   :  { %s794_s11 = smov 0   ;;  %s796_s12 = smov 0  }
   0x6   :  { %s798_s13 = smov 0   ;;  %s800_s14 = smov 0  }
   0x7 LB: > { %s493_s15 = sadd.s32 4294967295, %s767_s14   ;;  %s494_s16 = sadd.s32 4294967294, %s767_s14   ;;  %s767_s14 = sphi %s800_s14, %s19_s14   ;;  %s763_s13 = sphi %s798_s13, %s1003_s13   ;;  %s759_s12 = sphi %s796_s12, %s1002_s12   ;;  %s755_s11 = sphi %s794_s11, %s1001_s11   ;;  %s751_s10 = sphi %s792_s10, %s1000_s10   ;;  %s747_s9 = sphi %s790_s9, %s999_s9  }
   0x8   : > { %p83_p0 = scmp.ne.s32.totalorder %s751_s10, %s747_s9  ;;  %p824_p1 = scmp.eq.s32.totalorder %s493_s15, 0 }
   0x9   : > { %p828_p2 = scmp.eq.s32.totalorder %s493_s15, 1  ;;  %p117_p3 = scmp.eq.s32.totalorder %s494_s16, 1 }
   0xa   : > { %p834_p4 = por %p824_p1, %p83_p0  ;;  %p495_p5 = scmp.ge.s32.totalorder %s767_s14, 1 }
   0xb   : > { %p839_p6 = por %p117_p3, %p83_p0  ;;  %p124_p7 = scmp.lt.s32.totalorder %s767_s14, 3 }
   0xc   : > { %s135_s23 = sshll.u32 %s989_s0, 4  ;;  %s769_s25 = smov [#allocation2]   ;;  %s136_s23 = int_to_ptr.hbm [resolvable:$true] %s135_s23 }
   0xd   : > { %p847_p8 = pnand %p495_p5, %p124_p7  ;;  %s137_s26 = sshll.u32 %s769_s25, 4  ;;  %s138_s26 = int_to_ptr.vmem [resolvable:$true] %s137_s26 }
   0xe   : > { %p497_p11 = scmp.ge.s32.totalorder %s767_s14, 2  ;;  %s770_s27 = smov 128  }
   0xf   : > { %p551_p9 = pneg %p847_p8  ;;  %s771_s28 = smov 8  }
  0x10   : > { %s38_s29 = sadd.s32 1, %s763_s13  ;;  %s70_s30 = sadd.s32 1, %s755_s11 }
  0x11   : > { %p552_p10 = pnand %p551_p9, %p824_p1  ;;  %p40_p12 = scmp.ge.s32.totalorder %s38_s29, 2 }
  0x12   : > { %p77_p13 = scmp.ne.s32.totalorder %s755_s11, %s751_s10  ;;  %p78_p0 = scmp.eq.s32.totalorder %s767_s14, 0 }
  0x13   : > { %554 = dma.hbm_to_vmem [thread:$0]  (!%p552_p10), %s136_s23, 256, %s138_s26, [#allocation3], %s770_s27, %s770_s27, %s771_s28  }
  0x14   : > { %s1005_s29 = smov (%p40_p12, %s38_s29), 0  ;;  %p866_p3 = por %p78_p0, %p77_p13 }
  0x15   : > { %p872_p5 = por %p828_p2, %p77_p13  ;;  %s63_s5 = ssub.s32 %s763_s13, %s1005_s29 }
  0x16   : > { %p564_p7 = scmp.lt.s32.totalorder %s767_s14, 2  ;;  %p68_p9 = scmp.eq.s32.totalorder %s63_s5, 0 }
  0x17   : > { %s151_s6 = sand.u32 1, %s755_s11   ;;  %s537_s15 = sshll.u32 %s763_s13, 6 }
  0x18   : > { %s498_s7 = sshll.u32 %s151_s6, 6  ;;  %s165_s22 = scalar_lea.hbm %s990_s1, %s537_s15 }
  0x19   : > { %s881_s8 = scalar_select %p68_p9, %s755_s11, %s70_s30  }
  0x1a   : > { %s155_s23 = scalar_lea.vmem [#allocation5], %s498_s7  ;;  %s166_s18 = sshll.u32 %s165_s22, 4  ;;  %s167_s18 = int_to_ptr.hbm [resolvable:$true] %s166_s18 }
  0x1b   : > { %s168_s25 = sshll.u32 %s155_s23, 4  ;;  %p556_p2 = pnand %p564_p7, %p866_p3  ;;  %s169_s25 = int_to_ptr.vmem [resolvable:$true] %s168_s25 }
  0x1c   : > { %s152_s26 = scalar_lea.sflag [#allocation6], %s151_s6  ;;  %180 = sbr.rel (%p847_p8) target bundleno = 309 (0x135), region = 28 }
  0x1d   : > { %558 = dma.hbm_to_vmem [thread:$0]  (!%p556_p2), %s167_s18, 1024, %s169_s25, %s152_s26, %s770_s27, %s770_s27, %s771_s28  }
  0x21   : > { %734 = dma.done.wait (%p824_p1), [#allocation3], 256  }
  0x22   : > { %736 = vsyncadd (%p824_p1), [#allocation3], 4294967040  ;;  %s899_s30 = sand.u32 1, %s751_s10  }
  0x23   : > { %s503_s3 = sshll.u32 %s899_s30, 6  ;;  %s188_s5 = scalar_lea.sflag [#allocation6], %s899_s30 }
  0x24   : > { %s191_s6 = scalar_lea.vmem [#allocation5], %s503_s3 }
  0x25   : > { %738 = dma.done.wait (%p834_p4), %s188_s5, 1024  }
  0x26   : > { %740 = vsyncadd (%p834_p4), %s188_s5, 4294966272  ;;  %v217_v0 = vld [vmem:[#allocation2 + $0x8] sm:$0xff]  ;;  %v216_v1 = vld [vmem:[#allocation2] sm:$0xff]  ;;  %vm225_vm0 = vcmask 130048   ;;  %s504_s17 = sshll.u32 %s899_s30, 7  ;;  %vm267_vm1 = vcmask 64512  }
  0x27   : > { %252 = vmatpush.msra.mxu0 %v217_v0  ;;  %539 = vmatpush.msra.mxu2 %v217_v0  ;;  %v218_v2 = vld [vmem:[%s191_s6] ss:$2 sm:$0xff]  ;;  %v518_v4 = vld [vmem:[%s191_s6 + $0x21] ss:$2 sm:$0xff]  ;;  %v505_v6 = vld [vmem:[%s191_s6 + $0x10] ss:$2 sm:$0xff] }
  0x28   : > { %v506_v3 = vld [vmem:[%s191_s6 + $0x20] ss:$2 sm:$0xff]  ;;  %541 = vmatpush.msra.mxu3 %v217_v0  ;;  %327 = vmatpush.msra.mxu1 %v217_v0  ;;  %v516_v5 = vld [vmem:[%s191_s6 + $0x1] ss:$2 sm:$0xff]  ;;  %v507_v7 = vld [vmem:[%s191_s6 + $0x30] ss:$2 sm:$0xff] }
  0x29   : > { %253 = vmatpush.msra.mxu0 %v216_v1  ;;  %540 = vmatpush.msra.mxu2 %v216_v1  ;;  %v519_v8 = vld [vmem:[%s191_s6 + $0x31] ss:$2 sm:$0xff]  ;;  %s916_s19 = scalar_lea.vmem [#allocation7], %s504_s17  ;;  %s772_s24 = smov 120  }
  0x2a   : > { %508 = vmatmul.msk.f32.vlgmr.msra.gmra.mxu0 %vm225_vm0, %v218_v2  ;;  %510 = vmatmul.msk.f32.vlgmr.msra.gmra.mxu2 %vm225_vm0, %v506_v3  ;;  %v517_v9 = vld [vmem:[%s191_s6 + $0x11] ss:$2 sm:$0xff]  ;;  %s538_s27 = sshll.u32 %s759_s12, 7  ;;  %s385_s16 = sshll.u32 %s916_s19, 4  ;;  %s386_s16 = int_to_ptr.vmem [resolvable:$true] %s385_s16 }
  0x2b   : > { %542 = vmatpush.msra.mxu3 %v216_v1  ;;  %328 = vmatpush.msra.mxu1 %v216_v1  ;;  %s384_s15 = scalar_lea.hbm %s991_s2, %s538_s27  ;;  %s369_s22 = scalar_lea.sflag [#allocation4], %s899_s30 }
  0x2c   : > { %522 = vmatmul.msk.f32.vlgmr.msra.gmra.mxu3 %vm225_vm0, %v518_v4  ;;  %520 = vmatmul.msk.f32.vlgmr.msra.gmra.mxu1 %vm225_vm0, %v516_v5  ;;  %s387_s21 = sshll.u32 %s384_s15, 4  ;;  %s701_s26 = scalar_lea.hbm %s991_s2, 256  ;;  %s388_s21 = int_to_ptr.hbm [resolvable:$true] %s387_s21 }
  0x2d   : > { %s695_s12 = sshra.s32 %s388_s21, 4  ;;  %s696_s12 = int_to_ptr.hbm [resolvable:$true] %s695_s12 }
  0x2e   : > { %s697_s23 = scalar_lea.hbm %s696_s12, 128  ;;  %p702_p10 = scmp.lt.s32.totalorder %s696_s12, %s991_s2 }
  0x2f   : > { %p698_p1 = scmp.ne.s32.totalorder %s696_s12, %s697_s23  ;;  %p703_p12 = scmp.lt.s32.totalorder %s701_s26, %s697_s23 }
  0x31   : > { %p699_p4 = pnand %p698_p1, %p872_p5  ;;  %p704_p13 = por %p703_p12, %p702_p10 }
  0x32   : > { %509 = vmatmul.msk.f32.gmra.mxu0 %vm225_vm0, %v505_v6  ;;  %511 = vmatmul.msk.f32.gmra.mxu2 %vm225_vm0, %v507_v7 }
  0x33   : > { %p700_p8 = pneg %p699_p4 }
  0x34   : > { %523 = vmatmul.msk.f32.gmra.mxu3 %vm225_vm0, %v519_v8  ;;  %521 = vmatmul.msk.f32.gmra.mxu1 %vm225_vm0, %v517_v9 }
  0x35   : > { %p705_p0 = pnand %p704_p13, %p700_p8 }
  0xa7   : > { %v255_v10 = vpop.f32.mrf.mxu0 }
  0xa8   : > { %268 = vst.msk [vmem:[%s916_s19] sm:$0xff] %vm267_vm1, %v255_v10  ;;  %276 = vrot.lane.b32.xlu0 %v255_v10, %s772_s24 }
  0xa9   : > { %v330_v11 = vpop.f32.mrf.mxu1 }
  0xaa   : > { %524 = vst.msk [vmem:[%s916_s19 + $0x10] sm:$0xff] %vm267_vm1, %v330_v11  ;;  %351 = vrot.lane.b32.xlu2 %v330_v11, %s772_s24 }
  0xad   : > { %v261_v12 = vpop.f32.mrf.mxu2 }
  0xae   : > { %270 = vst.msk [vmem:[%s916_s19 + $0x40] sm:$0xff] %vm267_vm1, %v261_v12  ;;  %280 = vrot.lane.b32.xlu1 %v261_v12, %s772_s24 }
  0xaf   : > { %v258_v13 = vpop.f32.mrf.mxu0  ;;  %v336_v14 = vpop.f32.mrf.mxu3 }
  0xb0   : > { %269 = vst.msk [vmem:[%s916_s19 + $0x20] sm:$0xff] %vm267_vm1, %v258_v13  ;;  %278 = vrot.lane.b32.xlu0 %v258_v13, %s772_s24 }
  0xb1   : > { %526 = vst.msk [vmem:[%s916_s19 + $0x50] sm:$0xff] %vm267_vm1, %v336_v14  ;;  %v333_v15 = vpop.f32.mrf.mxu1 }
  0xb2   : > { %525 = vst.msk [vmem:[%s916_s19 + $0x30] sm:$0xff] %vm267_vm1, %v333_v15  ;;  %353 = vrot.lane.b32.xlu2 %v333_v15, %s772_s24 }
  0xb5   : > { %v264_v16 = vpop.f32.mrf.mxu2 }
  0xb6   : > { %271 = vst.msk [vmem:[%s916_s19 + $0x60] sm:$0xff] %vm267_vm1, %v264_v16  ;;  %282 = vrot.lane.b32.xlu1 %v264_v16, %s772_s24 }
  0xb7   : > { %v339_v17 = vpop.f32.mrf.mxu3 }
  0xb8   : > { %355 = vrot.lane.b32.xlu0 %v336_v14, %s772_s24  ;;  %527 = vst.msk [vmem:[%s916_s19 + $0x70] sm:$0xff] %vm267_vm1, %v339_v17 }
  0xbe   : > { %357 = vrot.lane.b32.xlu1 %v339_v17, %s772_s24 }
 0x104   : > { %v352_v18 = vpop.permute.xlu2 %351 }
 0x105   : > { %528 = vst.msk [vmem:[%s916_s19 + $0x18] sm:$0xff] %vm267_vm1, %v352_v18 }
 0x10c   : > { %v354_v19 = vpop.permute.xlu2 %353 }
 0x10d   : > { %529 = vst.msk [vmem:[%s916_s19 + $0x38] sm:$0xff] %vm267_vm1, %v354_v19 }
 0x11a   : > { %v277_v20 = vpop.permute.xlu0 %276 }
 0x11b   : > { %512 = vst.msk [vmem:[%s916_s19 + $0x8] sm:$0xff] %vm267_vm1, %v277_v20 }
 0x120   : > { %v281_v21 = vpop.permute.xlu1 %280 }
 0x121   : > { %514 = vst.msk [vmem:[%s916_s19 + $0x48] sm:$0xff] %vm267_vm1, %v281_v21 }
 0x122   : > { %v279_v22 = vpop.permute.xlu0 %278 }
 0x123   : > { %513 = vst.msk [vmem:[%s916_s19 + $0x28] sm:$0xff] %vm267_vm1, %v279_v22 }
 0x128   : > { %v283_v23 = vpop.permute.xlu1 %282 }
 0x129   : > { %515 = vst.msk [vmem:[%s916_s19 + $0x68] sm:$0xff] %vm267_vm1, %v283_v23 }
 0x12a   : > { %v356_v24 = vpop.permute.xlu0 %355 }
 0x12b   : > { %530 = vst.msk [vmem:[%s916_s19 + $0x58] sm:$0xff] %vm267_vm1, %v356_v24 }
 0x130   : > { %v358_v25 = vpop.permute.xlu1 %357 }
 0x131   : > { %531 = vst.msk [vmem:[%s916_s19 + $0x78] sm:$0xff] %vm267_vm1, %v358_v25 }
 0x132   : > { %708 = shalt.err (!%p705_p0)
}
 0x133   : > { %s773_s30 = smov 128   ;;  %s774_s6 = smov 8  }
 0x134   : > { %549 = dma.vmem_to_hbm [thread:$0]  (%p872_p5), %s386_s16, 2048, %s388_s21, %s369_s22, %s773_s30, %s773_s30, %s774_s6  }
 0x135 PF: > { %s402_s17 = sand.u32 1, %s747_s9   ;;  %p560_p3 = pnand %p497_p11, %p839_p6 }
 0x136   : > { %s403_s19 = scalar_lea.sflag [#allocation4], %s402_s17 }
 0x137   : > { %p561_p7 = pneg %p560_p3 }
 0x139   : > { %742 = dma.done.wait (%p561_p7), %s403_s19, 2048  }
 0x13a   : > { %744 = vsyncadd (%p561_p7), %s403_s19, 4294965248  ;;  %s19_s14 = sadd.s32 1, %s767_s14   ;;  %s999_s9 = smov %s751_s10 }
 0x13b   : > { %p16_p9 = scmp.ge.s32.totalorder %s19_s14, 4   ;;  %s1000_s10 = smov %s755_s11 }
 0x13c   : > { %s1001_s11 = smov %s881_s8  ;;  %s1002_s12 = smov %s763_s13 }
 0x13d   : > { %s1003_s13 = smov %s1005_s29  ;;  %18 = sbr.rel (!%p16_p9) target bundleno = 7 (0x7), region = 88 }
 0x142   :  { %409 = vsyncpa [#allocation3], 1 }
 0x143   :  { %411 = vsyncpa [#allocation3 + $0x1], 1 }
 0x144   :  { %412 = vsyncpa [#allocation6], 1 }
 0x145   :  { %414 = vsyncpa [#allocation6 + $0x1], 1 }
 0x146   :  { %415 = vsyncpa [#allocation4], 1 }
 0x147   :  { %417 = vsyncpa [#allocation4 + $0x1], 1 }

</bundles_post_ra>
